<compile_context>
chip_gen: v6e
topology: v6e:2x2x1
jax: 0.10.0
libtpu: 0.0.40
codegen_flags: <defaults>
</compile_context>

<pallas_src>
import functools

import jax
import jax.numpy as jnp
from jax import lax
from jax.experimental import pallas as pl
from jax.experimental.pallas import tpu as pltpu

MIA_GELU_MAGIC_FACTOR = 0.5
MIA_GELU_MAGIC_SUMMAND = 0.044715
_SQRT_2_OVER_PI = 0.7978845608028654  # sqrt(2/pi)
_GELU_C1 = _SQRT_2_OVER_PI
_GELU_C2 = _SQRT_2_OVER_PI * MIA_GELU_MAGIC_SUMMAND


def _mia_gelu_f32(x):
    # 0.5*x*(1 + tanh(x*(C1 + C2*x*x)))  ==  reference formula, one fewer mul.
    return MIA_GELU_MAGIC_FACTOR * x * (1.0 + jnp.tanh(x * (_GELU_C1 + _GELU_C2 * x * x)))


def _ffn_kernel(x_ref, w1_ref, b1_ref, w2_ref, b2_ref, o_ref, acc_ref, *,
                mxu_dtype, hidden_size, th, mask_h_tail):
    """One (tm, E) output tile of the fused FFN, accumulated over the H grid axis."""
    h = pl.program_id(1)

    @pl.when(h == 0)
    def _():
        acc_ref[...] = jnp.zeros_like(acc_ref)

    # ---- GEMM1 partial: (tm, E) @ (E, th) -> (tm, th), f32 accumulate -------
    x = x_ref[...].astype(mxu_dtype)
    w1 = w1_ref[...].astype(mxu_dtype)
    h_blk = jnp.dot(x, w1, preferred_element_type=jnp.float32)
    h_blk = h_blk + b1_ref[...].astype(jnp.float32)

    # ---- fused MiaGelu while the tile is resident in VMEM -------------------
    h_blk = _mia_gelu_f32(h_blk)

    w2 = w2_ref[...]
    if mask_h_tail:
        # H not a multiple of th: zero the ragged tail columns of h_blk AND the
        # matching rows of W2 so edge-block garbage can never reach the
        # accumulator (0 * 0 == 0, NaN-proof).  Static branch: no cost when
        # H % th == 0.
        valid = hidden_size - h * th
        cols = lax.broadcasted_iota(jnp.int32, h_blk.shape, 1)
        h_blk = jnp.where(cols < valid, h_blk, 0.0)
        rows = lax.broadcasted_iota(jnp.int32, w2.shape, 0)
        w2 = jnp.where(rows < valid, w2, jnp.zeros_like(w2))

    # ---- GEMM2 partial: (tm, th) @ (th, E) accumulated over the H axis ------
    acc_ref[...] += jnp.dot(h_blk.astype(mxu_dtype), w2.astype(mxu_dtype),
                            preferred_element_type=jnp.float32)

    @pl.when(h == pl.num_programs(1) - 1)
    def _():
        o_ref[...] = (acc_ref[...] + b2_ref[...].astype(jnp.float32)).astype(o_ref.dtype)


def _round_up(x, m):
    return ((x + m - 1) // m) * m


def _vmem_caps():
    """(working-set budget, scoped vmem limit) derived from the chip's VMEM."""
    try:
        info = pltpu.get_tpu_info()
        cap = int(getattr(info, "vmem_capacity_bytes", 0)) or (64 << 20)
    except Exception:
        cap = 64 << 20  # conservative fallback = v7x per-TC physical VMEM
    budget = min(cap // 2, 80 << 20)            # double-buffered working-set target
    limit = min(int(cap * 0.75), 100 << 20)     # compiler scoped-VMEM limit, with headroom
    return budget, limit


def _pick_hidden_tile(H, target):
    """Hidden (4*emb) tile: prefer an exact divisor that is a multiple of 128;
    otherwise return a multiple of 128 and let the kernel mask the ragged tail."""
    if H <= target:
        return H
    t = (min(target, H) // 128) * 128
    for cand in range(t, 127, -128):
        if H % cand == 0:
            return cand
    return max(t, 128)  # non-dividing: ragged H tail handled by in-kernel masking


def _est_vmem_bytes(tm, th, E, itemsize):
    return (2 * tm * E * itemsize        # x block (double buffered)
            + 2 * E * th * itemsize      # W1 strip
            + 2 * th * E * itemsize      # W2 strip
            + 2 * (th + E) * itemsize    # biases
            + 2 * tm * E * itemsize      # output block
            + tm * E * 4)                # f32 accumulator scratch


def mia_feed_forward(x, w1, b1, w2, b2, *, tm_target=512, th_target=1024,
                     use_bf16_mxu=True):
    """MiaFeedForward forward pass.

    x:  (..., emb)
    w1: (emb, 4*emb),  b1: (4*emb,)
    w2: (4*emb, emb),  b2: (emb,)
    """
    orig_shape = x.shape
    E = orig_shape[-1]
    x2d = x.reshape(-1, E)                   # zero-copy reshape, no padding
    M = x2d.shape[0]
    H = w1.shape[1]
    assert w1.shape == (E, H) and w2.shape == (H, E)
    itemsize = jnp.dtype(x2d.dtype).itemsize

    if use_bf16_mxu and x2d.dtype == jnp.float32:
        mxu_dtype = jnp.bfloat16             # MXU-native feed, f32 accumulate
    else:
        mxu_dtype = x2d.dtype

    budget, vmem_limit = _vmem_caps()

    # ---- tile selection ------------------------------------------------------
    tm = min(tm_target, _round_up(M, 8))
    th = _pick_hidden_tile(H, th_target)
    while _est_vmem_bytes(tm, th, E, itemsize) > budget and th > 256 and th % 256 == 0:
        th //= 2
    while _est_vmem_bytes(tm, th, E, itemsize) > budget and tm > 16:
        tm = _round_up(max(8, tm // 2), 8)
    # v7x megacore: keep >= 2 blocks on the parallel (M) axis when M is not tiny
    if pl.cdiv(M, tm) == 1 and M >= 64:
        tm = _round_up(pl.cdiv(M, 2), 8)

    mask_h_tail = (H % th) != 0
    grid = (pl.cdiv(M, tm), pl.cdiv(H, th))

    # ---- advisory cost estimate ---------------------------------------------
    flops = int(4 * M * E * H)               # two GEMMs, 2*M*E*H flops each
    transcendentals = int(M * H)             # one tanh per hidden activation
    bytes_accessed = int((M * E + E * H + H + H * E + E + M * E) * itemsize)

    # TODO(synk): sweep pipeline_mode=pl.Buffered(3) on the W1/W2 specs once the
    # per-chip VMEM headroom after tile enlargement is confirmed.
    out2d = pl.pallas_call(
        functools.partial(_ffn_kernel, mxu_dtype=mxu_dtype, hidden_size=H,
                          th=th, mask_h_tail=mask_h_tail),
        out_shape=jax.ShapeDtypeStruct((M, E), x2d.dtype),
        grid_spec=pltpu.PrefetchScalarGridSpec(
            num_scalar_prefetch=0,
            grid=grid,
            in_specs=[
                pl.BlockSpec((tm, E), lambda i, h: (i, 0)),   # x tile (block idx constant over H -> fetched once)
                pl.BlockSpec((E, th), lambda i, h: (0, h)),   # W1 strip
                pl.BlockSpec((1, th), lambda i, h: (0, h)),   # b1 strip
                pl.BlockSpec((th, E), lambda i, h: (h, 0)),   # W2 strip
                pl.BlockSpec((1, E), lambda i, h: (0, 0)),    # b2
            ],
            out_specs=pl.BlockSpec((tm, E), lambda i, h: (i, 0)),
            scratch_shapes=[pltpu.VMEM((tm, E), jnp.float32)],
        ),
        compiler_params=pltpu.CompilerParams(
            dimension_semantics=("parallel", "arbitrary"),
            vmem_limit_bytes=vmem_limit,
        ),
        cost_estimate=pl.CostEstimate(
            flops=flops,
            transcendentals=transcendentals,
            bytes_accessed=bytes_accessed,
        ),
    )(x2d, w1, b1.reshape(1, H), w2, b2.reshape(1, E))

    return out2d.reshape(orig_shape)


# ----------------------------- reference -------------------------------------
def mia_feed_forward_ref(x, w1, b1, w2, b2):
    xf = x.astype(jnp.float32)
    h = xf @ w1.astype(jnp.float32) + b1.astype(jnp.float32)
    h = MIA_GELU_MAGIC_FACTOR * h * (
        1.0 + jnp.tanh(_SQRT_2_OVER_PI * (h + MIA_GELU_MAGIC_SUMMAND * h ** 3)))
    out = h @ w2.astype(jnp.float32) + b2.astype(jnp.float32)
    return out.astype(x.dtype)


if __name__ == "__main__":
    key = jax.random.PRNGKey(0)
    k1, k2, k3, k4, k5 = jax.random.split(key, 5)

    batch, seq, emb = 2, 8, 32          # mia_emb_dim = 32
    hidden = 4 * emb                    # 128

    x = jax.random.normal(k1, (batch, seq, emb), dtype=jnp.float32)
    w1 = jax.random.normal(k2, (emb, hidden), dtype=jnp.float32) * 0.1
    b1 = jax.random.normal(k3, (hidden,), dtype=jnp.float32) * 0.1
    w2 = jax.random.normal(k4, (hidden, emb), dtype=jnp.float32) * 0.1
    b2 = jax.random.normal(k5, (emb,), dtype=jnp.float32) * 0.1

    ref = mia_feed_forward_ref(x, w1, b1, w2, b2)

    # Default path: bf16 MXU feed with f32 accumulation (relaxed tolerance).
    out = jax.block_until_ready(mia_feed_forward(x, w1, b1, w2, b2))
    assert out.shape == x.shape and out.dtype == x.dtype
    assert jnp.allclose(out, ref, atol=2e-2, rtol=2e-2), "bf16-MXU path mismatch vs reference"

    # Pure f32 path: bit-for-bit-grade check against the f32 reference.
    out_f32 = jax.block_until_ready(
        mia_feed_forward(x, w1, b1, w2, b2, use_bf16_mxu=False))
    assert jnp.allclose(out_f32, ref, atol=1e-4, rtol=1e-4), "f32 path mismatch vs reference"

    print("KERNEL_OK")
</pallas_src>

<mosaic_0001>
module attributes {stable_mosaic.version = 11 : i64} {
  func.func @_ffn_kernel(%arg0: i32, %arg1: i32, %arg2: memref<16x32xf32, #tpu.memory_space<vmem>>, %arg3: memref<32x128xf32, #tpu.memory_space<vmem>>, %arg4: memref<1x128xf32, #tpu.memory_space<vmem>>, %arg5: memref<128x32xf32, #tpu.memory_space<vmem>>, %arg6: memref<1x32xf32, #tpu.memory_space<vmem>>, %arg7: memref<16x32xf32, #tpu.memory_space<vmem>>, %arg8: memref<16x32xf32, #tpu.memory_space<vmem>>) attributes {dimension_semantics = [#tpu.dimension_semantics<parallel>, #tpu.dimension_semantics<arbitrary>], iteration_bounds = array<i64: 1, 1>, scalar_prefetch = 0 : i64, scratch_operands = 1 : i64, tpu.core_type = #tpu.core_type<tc>, window_params = [{transform_indices = @transform_0, window_bounds = array<i64: 16, 32>}, {transform_indices = @transform_1, window_bounds = array<i64: 32, 128>}, {transform_indices = @transform_2, window_bounds = array<i64: 1, 128>}, {transform_indices = @transform_3, window_bounds = array<i64: 128, 32>}, {pipeline_mode = #tpu.pipeline_mode<synchronous>, transform_indices = @transform_4, window_bounds = array<i64: 1, 32>}, {transform_indices = @transform_5, window_bounds = array<i64: 16, 32>}]} {
    %c0_i32 = arith.constant 0 : i32
    %0 = arith.cmpi eq, %arg1, %c0_i32 : i32
    %1 = arith.extui %0 : i1 to i32
    %c0_i32_0 = arith.constant 0 : i32
    %2 = arith.cmpi ne, %1, %c0_i32_0 : i32
    scf.if %2 {
      %cst_19 = arith.constant 0.000000e+00 : f32
      %33 = vector.broadcast %cst_19 : f32 to vector<16x32xf32>
      %c0_20 = arith.constant 0 : index
      %c0_21 = arith.constant 0 : index
      %34 = vector.load %arg8[%c0_20, %c0_21] : memref<16x32xf32, #tpu.memory_space<vmem>>, vector<16x32xf32>
      tpu.vector_store %arg8[%c0_20, %c0_21], %33 {strides = array<i32>} : memref<16x32xf32, #tpu.memory_space<vmem>>, vector<16x32xf32>,
    } else {
    }
    %c0 = arith.constant 0 : index
    %c0_1 = arith.constant 0 : index
    %3 = vector.load %arg2[%c0, %c0_1] : memref<16x32xf32, #tpu.memory_space<vmem>>, vector<16x32xf32>
    %4 = arith.truncf %3 : vector<16x32xf32> to vector<16x32xbf16>
    %c0_2 = arith.constant 0 : index
    %c0_3 = arith.constant 0 : index
    %5 = vector.load %arg3[%c0_2, %c0_3] : memref<32x128xf32, #tpu.memory_space<vmem>>, vector<32x128xf32>
    %6 = arith.truncf %5 : vector<32x128xf32> to vector<32x128xbf16>
    %cst = arith.constant dense<0.000000e+00> : vector<16x128xf32>
    %7 = tpu.matmul %4, %6, %cst {dimension_numbers = #tpu.dot_dimension_numbers<[1], [0], [0], [1], [0, 0, 1, 1], [], []>} : vector<16x32xbf16>, vector<32x128xbf16>, vector<16x128xf32> -> vector<16x128xf32>
    %c0_4 = arith.constant 0 : index
    %c0_5 = arith.constant 0 : index
    %8 = vector.load %arg4[%c0_4, %c0_5] : memref<1x128xf32, #tpu.memory_space<vmem>>, vector<1x128xf32>
    %9 = vector.broadcast %8 : vector<1x128xf32> to vector<16x128xf32>
    %10 = arith.addf %7, %9 : vector<16x128xf32>
    %cst_6 = arith.constant 5.000000e-01 : f32
    %11 = vector.broadcast %cst_6 : f32 to vector<16x128xf32>
    %12 = arith.mulf %11, %10 : vector<16x128xf32>
    %cst_7 = arith.constant 0.0356774069 : f32
    %13 = vector.broadcast %cst_7 : f32 to vector<16x128xf32>
    %14 = arith.mulf %13, %10 : vector<16x128xf32>
    %15 = arith.mulf %14, %10 : vector<16x128xf32>
    %cst_8 = arith.constant 0.797884583 : f32
    %16 = vector.broadcast %cst_8 : f32 to vector<16x128xf32>
    %17 = arith.addf %16, %15 : vector<16x128xf32>
    %18 = arith.mulf %10, %17 : vector<16x128xf32>
    %19 = math.tanh %18 : vector<16x128xf32>
    %cst_9 = arith.constant 1.000000e+00 : f32
    %20 = vector.broadcast %cst_9 : f32 to vector<16x128xf32>
    %21 = arith.addf %20, %19 : vector<16x128xf32>
    %22 = arith.mulf %12, %21 : vector<16x128xf32>
    %c0_10 = arith.constant 0 : index
    %c0_11 = arith.constant 0 : index
    %23 = vector.load %arg5[%c0_10, %c0_11] : memref<128x32xf32, #tpu.memory_space<vmem>>, vector<128x32xf32>
    %c0_12 = arith.constant 0 : index
    %c0_13 = arith.constant 0 : index
    %24 = vector.load %arg8[%c0_12, %c0_13] : memref<16x32xf32, #tpu.memory_space<vmem>>, vector<16x32xf32>
    %25 = arith.truncf %22 : vector<16x128xf32> to vector<16x128xbf16>
    %26 = arith.truncf %23 : vector<128x32xf32> to vector<128x32xbf16>
    %cst_14 = arith.constant dense<0.000000e+00> : vector<16x32xf32>
    %27 = tpu.matmul %25, %26, %cst_14 {dimension_numbers = #tpu.dot_dimension_numbers<[1], [0], [0], [1], [0, 0, 1, 1], [], []>} : vector<16x128xbf16>, vector<128x32xbf16>, vector<16x32xf32> -> vector<16x32xf32>
    %28 = arith.addf %24, %27 : vector<16x32xf32>
    %c0_15 = arith.constant 0 : index
    %c0_16 = arith.constant 0 : index
    %29 = vector.load %arg8[%c0_15, %c0_16] : memref<16x32xf32, #tpu.memory_space<vmem>>, vector<16x32xf32>
    tpu.vector_store %arg8[%c0_15, %c0_16], %28 {strides = array<i32>} : memref<16x32xf32, #tpu.memory_space<vmem>>, vector<16x32xf32>,
    %c0_i32_17 = arith.constant 0 : i32
    %30 = arith.cmpi eq, %arg1, %c0_i32_17 : i32
    %31 = arith.extui %30 : i1 to i32
    %c0_i32_18 = arith.constant 0 : i32
    %32 = arith.cmpi ne, %31, %c0_i32_18 : i32
    scf.if %32 {
      %c0_19 = arith.constant 0 : index
      %c0_20 = arith.constant 0 : index
      %33 = vector.load %arg8[%c0_19, %c0_20] : memref<16x32xf32, #tpu.memory_space<vmem>>, vector<16x32xf32>
      %c0_21 = arith.constant 0 : index
      %c0_22 = arith.constant 0 : index
      %34 = vector.load %arg6[%c0_21, %c0_22] : memref<1x32xf32, #tpu.memory_space<vmem>>, vector<1x32xf32>
      %35 = vector.broadcast %34 : vector<1x32xf32> to vector<16x32xf32>
      %36 = arith.addf %33, %35 : vector<16x32xf32>
      %c0_23 = arith.constant 0 : index
      %c0_24 = arith.constant 0 : index
      %37 = vector.load %arg7[%c0_23, %c0_24] : memref<16x32xf32, #tpu.memory_space<vmem>>, vector<16x32xf32>
      tpu.vector_store %arg7[%c0_23, %c0_24], %36 {strides = array<i32>} : memref<16x32xf32, #tpu.memory_space<vmem>>, vector<16x32xf32>,
    } else {
    }
    return
  }
  func.func @transform_0(%arg0: i32, %arg1: i32) -> (i32, i32) {
    %c0_i32 = arith.constant 0 : i32
    %c0_i32_0 = arith.constant 0 : i32
    return %arg0, %c0_i32 : i32, i32
  }
  func.func @transform_1(%arg0: i32, %arg1: i32) -> (i32, i32) {
    %c0_i32 = arith.constant 0 : i32
    %c0_i32_0 = arith.constant 0 : i32
    return %c0_i32, %arg1 : i32, i32
  }
  func.func @transform_2(%arg0: i32, %arg1: i32) -> (i32, i32) {
    %c0_i32 = arith.constant 0 : i32
    %c0_i32_0 = arith.constant 0 : i32
    return %c0_i32, %arg1 : i32, i32
  }
  func.func @transform_3(%arg0: i32, %arg1: i32) -> (i32, i32) {
    %c0_i32 = arith.constant 0 : i32
    %c0_i32_0 = arith.constant 0 : i32
    return %arg1, %c0_i32 : i32, i32
  }
  func.func @transform_4(%arg0: i32, %arg1: i32) -> (i32, i32) {
    %c0_i32 = arith.constant 0 : i32
    %c0_i32_0 = arith.constant 0 : i32
    %c0_i32_1 = arith.constant 0 : i32
    return %c0_i32, %c0_i32_0 : i32, i32
  }
  func.func @transform_5(%arg0: i32, %arg1: i32) -> (i32, i32) {
    %c0_i32 = arith.constant 0 : i32
    %c0_i32_0 = arith.constant 0 : i32
    return %arg0, %c0_i32 : i32, i32
  }
}

</mosaic_0001>

<bundles_post_ra>
// kernel: tpu_custom_call.1
= control target key start
LH: loop header
LB: loop body
LE: loop exit
PB: predicated region body
PF: predicated region fallthrough
CT: control target
= control target key end

     0   :  { %vm26_vm0 = vcmask 261120   ;;  %v284_v3 = vmov 0.0   ;;  %vm285_vm1 = vmmov 0   ;;  %s401_s0 = inlined_call_operand.vmem [shape: f32[16,32], index: 0, kind: input, shape index: {}]   ;;  %s402_s1 = inlined_call_operand.vmem [shape: f32[32,128], index: 1, kind: input, shape index: {}]   ;;  %s403_s2 = inlined_call_operand.vmem [shape: f32[1,128], index: 2, kind: input, shape index: {}]   ;;  %s404_s3 = inlined_call_operand.vmem [shape: f32[128,32], index: 3, kind: input, shape index: {}]   ;;  %s405_s4 = inlined_call_operand.vmem [shape: f32[1,32], index: 4, kind: input, shape index: {}]   ;;  %s406_s5 = inlined_call_operand.hbm [shape: f32[16,32], index: 5, kind: output, shape index: {}]  }
   0x1   :  { %v34_v0 = vld [vmem:[%s402_s1 + $0x10] sm:$0xff]  ;;  %v35_v1 = vld [vmem:[%s402_s1 + $0x18] sm:$0xff]  ;;  %v32_v2 = vld [vmem:[%s402_s1] sm:$0xff]  ;;  %225 = vmatprep.subr.bf16.mxu0 %v284_v3  ;;  %229 = vmatprep.mubr.msk.bf16.mxu0 %vm285_vm1, %v284_v3  ;;  %27 = vst.msk [vmem:[#allocation2] sm:$0xff] %vm26_vm0, %v284_v3 }
   0x2   :  { %v37_v4 = vpack.c.bf16 %v35_v1, %v34_v0  ;;  %v33_v5 = vld [vmem:[%s402_s1 + $0x8] sm:$0xff]  ;;  %28 = vst.msk [vmem:[#allocation2 + $0x8] sm:$0xff] %vm26_vm0, %v284_v3  ;;  %233 = vmatprep.subr.bf16.mxu1 %v284_v3  ;;  %249 = vmatprep.mubr.msk.bf16.mxu1 %vm285_vm1, %v284_v3 }
   0x3   :  { %10 = vsyncpa [#allocation4], 0  ;;  %v36_v6 = vpack.c.bf16 %v33_v5, %v32_v2  ;;  %v29_v7 = vld [vmem:[%s401_s0] sm:$0xff]  ;;  %v30_v8 = vld [vmem:[%s401_s0 + $0x8] sm:$0xff]  ;;  %s286_s10 = smov [#allocation3]  }
   0x4   :  { %226 = vmatpush3.bf16.msra.mxu0 %v37_v4  ;;  %v31_v9 = vpack.c.bf16 %v30_v8, %v29_v7  ;;  %v120_v10 = vld [vmem:[%s404_s3 + $0x70] sm:$0xff]  ;;  %v121_v11 = vld [vmem:[%s404_s3 + $0x78] sm:$0xff]  ;;  %v118_v13 = vld [vmem:[%s404_s3 + $0x60] sm:$0xff]  ;;  %s199_s11 = sshll.u32 %s286_s10, 4  ;;  %s200_s11 = int_to_ptr.vmem [resolvable:$true] %s199_s11 }
   0x5   :  { %227 = vmatprep.subr.bf16.mxu0 %v284_v3  ;;  %v132_v12 = vpack.c.bf16 %v121_v11, %v120_v10  ;;  %v119_v14 = vld [vmem:[%s404_s3 + $0x68] sm:$0xff]  ;;  %v116_v16 = vld [vmem:[%s404_s3 + $0x50] sm:$0xff]  ;;  %v117_v17 = vld [vmem:[%s404_s3 + $0x58] sm:$0xff]  ;;  %s262_s12 = scalar_lea.vmem %s200_s11, 256  ;;  %p267_p1 = scmp.lt.s32.totalorder %s200_s11, %s200_s11 }
   0x6   :  { %v131_v15 = vpack.c.bf16 %v119_v14, %v118_v13  ;;  %v130_v18 = vpack.c.bf16 %v117_v17, %v116_v16  ;;  %v114_v19 = vld [vmem:[%s404_s3 + $0x40] sm:$0xff]  ;;  %v115_v20 = vld [vmem:[%s404_s3 + $0x48] sm:$0xff]  ;;  %v112_v22 = vld [vmem:[%s404_s3 + $0x30] sm:$0xff]  ;;  %p263_p0 = scmp.ne.s32.totalorder %s200_s11, %s262_s12  ;;  %p268_p2 = scmp.lt.s32.totalorder %s262_s12, %s262_s12 }
   0x7   :  { %234 = vmatpush3.bf16.msra.mxu1 %v132_v12  ;;  %v129_v21 = vpack.c.bf16 %v115_v20, %v114_v19  ;;  %v113_v23 = vld [vmem:[%s404_s3 + $0x38] sm:$0xff]  ;;  %v110_v25 = vld [vmem:[%s404_s3 + $0x20] sm:$0xff]  ;;  %v111_v26 = vld [vmem:[%s404_s3 + $0x28] sm:$0xff] }
   0x8   :  { %228 = vmatpush3.bf16.msra.mxu0 %v36_v6  ;;  %235 = vmatprep.subr.bf16.mxu1 %v284_v3  ;;  %v128_v24 = vpack.c.bf16 %v113_v23, %v112_v22  ;;  %v127_v27 = vpack.c.bf16 %v111_v26, %v110_v25  ;;  %v108_v28 = vld [vmem:[%s404_s3 + $0x10] sm:$0xff]  ;;  %v109_v29 = vld [vmem:[%s404_s3 + $0x18] sm:$0xff]  ;;  %v106_v31 = vld [vmem:[%s404_s3] sm:$0xff]  ;;  %p269_p3 = por %p268_p2, %p267_p1 }
   0x9   :  { %v126_v30 = vpack.c.bf16 %v109_v29, %v108_v28  ;;  %v107_v32 = vld [vmem:[%s404_s3 + $0x8] sm:$0xff]  ;;  %v210_v34 = vld [vmem:[%s403_s2] ss:$0 sm:$0xff] }
   0xa   :  { %v125_v33 = vpack.c.bf16 %v107_v32, %v106_v31  ;;  %v122_v58 = vld [vmem:[#allocation2] sm:$0xff]  ;;  %v123_v62 = vld [vmem:[#allocation2 + $0x8] sm:$0xff]  ;;  %p270_p4 = pnand %p269_p3, %p263_p0 }
   0xb   :  { %230 = vmatmul.mubr.msk.bf16.vlgmr.msra.gmra.mxu0 %vm26_vm0, %v31_v9  ;;  %236 = vmatpush3.bf16.msra.mxu1 %v131_v15  ;;  %v212_v2 = vld [vmem:[%s405_s4] ss:$0 sm:$0xff] }
   0xc   :  { %237 = vmatprep.subr.bf16.mxu1 %v284_v3 }
   0xf   :  { %238 = vmatpush3.bf16.msra.mxu1 %v130_v18 }
  0x10   :  { %239 = vmatprep.subr.bf16.mxu1 %v284_v3 }
  0x13   :  { %240 = vmatpush3.bf16.msra.mxu1 %v129_v21 }
  0x14   :  { %241 = vmatprep.subr.bf16.mxu1 %v284_v3 }
  0x17   :  { %242 = vmatpush3.bf16.msra.mxu1 %v128_v24 }
  0x18   :  { %243 = vmatprep.subr.bf16.mxu1 %v284_v3 }
  0x1b   :  { %244 = vmatpush3.bf16.msra.mxu1 %v127_v27 }
  0x1c   :  { %245 = vmatprep.subr.bf16.mxu1 %v284_v3 }
  0x1f   :  { %246 = vmatpush3.bf16.msra.mxu1 %v126_v30 }
  0x20   :  { %247 = vmatprep.subr.bf16.mxu1 %v284_v3 }
  0x23   :  { %248 = vmatpush3.bf16.msra.mxu1 %v125_v33 }
  0xcb   :  { %v83_v35 = vpop.f32.mrf.mxu0 }
  0xcc   :  { %v84_v36 = vadd.f32 %v210_v34, %v83_v35 }
  0xcd   :  { %v231_v37 = vpop.f32.mrf.mxu0 }
  0xce   :  { %v92_v38 = vmul.f32 0.035677407, %v84_v36  ;;  %v90_v52 = vmul.f32 0.5, %v84_v36 }
  0xcf   :  { %v86_v39 = vpop.f32.mrf.mxu0 }
  0xd0   :  { %v94_v40 = vmul.f32 %v92_v38, %v84_v36  ;;  %v87_v41 = vadd.f32 %v210_v34, %v86_v39 }
  0xd1   :  { %v232_v42 = vpop.f32.mrf.mxu0 }
  0xd2   :  { %v96_v43 = vadd.f32 0.7978846, %v94_v40  ;;  %v93_v44 = vmul.f32 0.035677407, %v87_v41  ;;  %v91_v53 = vmul.f32 0.5, %v87_v41 }
  0xd4   :  { %v98_v45 = vmul.f32 %v96_v43, %v84_v36  ;;  %v95_v46 = vmul.f32 %v93_v44, %v87_v41 }
  0xd6   :  { %258 = vtanh.f32 %v98_v45  ;;  %v97_v47 = vadd.f32 0.7978846, %v95_v46 }
  0xd8   :  { %v99_v48 = vmul.f32 %v97_v47, %v87_v41 }
  0xda   :  { %260 = vtanh.f32 %v99_v48 }
  0xe3   :  { %v259_v49 = vpop.eup %258 }
  0xe4   :  { %v102_v50 = vadd.f32 1.0, %v259_v49 }
  0xe6   :  { %v104_v55 = vmul.f32 %v102_v50, %v90_v52 }
  0xe7   :  { %v261_v51 = vpop.eup %260 }
  0xe8   :  { %v103_v54 = vadd.f32 1.0, %v261_v51 }
  0xea   :  { %v105_v56 = vmul.f32 %v103_v54, %v91_v53 }
  0xec   :  { %v124_v57 = vpack.c.bf16 %v105_v56, %v104_v55 }
  0xee   :  { %250 = vmatmul.mubr.bf16.vlgmr.msra.gmra.mxu1 %v124_v57 }
 0x1ae   :  { %v167_v59 = vpop.f32.mrf.mxu1 }
 0x1af   :  { %v174_v60 = vadd.f32 %v167_v59, %v122_v58 }
 0x1b0   :  { %v251_v61 = vpop.f32.mrf.mxu1 }
 0x1b1   :  { %176 = vst.msk [vmem:[#allocation2] sm:$0xff] %vm26_vm0, %v174_v60 }
 0x1b2   :  { %v170_v63 = vpop.f32.mrf.mxu1 }
 0x1b3   :  { %v175_v0 = vadd.f32 %v170_v63, %v123_v62 }
 0x1b4   :  { %v252_v1 = vpop.f32.mrf.mxu1 }
 0x1b5   :  { %177 = vst.msk [vmem:[#allocation2 + $0x8] sm:$0xff] %vm26_vm0, %v175_v0 }
 0x1b8   :  { %v181_v3 = vld [vmem:[#allocation2] sm:$0xff] }
 0x1b9   :  { %v190_v4 = vadd.f32 %v212_v2, %v181_v3 }
 0x1bb   :  { %192 = vst.msk [vmem:[#allocation3] sm:$0xff] %vm26_vm0, %v190_v4 }
 0x1bc   :  { %v182_v5 = vld [vmem:[#allocation2 + $0x8] sm:$0xff] }
 0x1bd   :  { %v191_v6 = vadd.f32 %v212_v2, %v182_v5 }
 0x1bf   :  { %193 = vst.msk [vmem:[#allocation3 + $0x8] sm:$0xff] %vm26_vm0, %v191_v6 }
 0x1c0   :  { %273 = shalt.err (!%p270_p4)
}
 0x1c1   :  { %s287_s13 = smov 128   ;;  %s288_s4 = smov 8  }
 0x1c2   :  { %205 = dma.vmem_to_hbm [thread:$0]  %s200_s11, 256, %s406_s5, [#allocation4], %s287_s13, %s287_s13, %s288_s4  }
 0x1c3   :  { %282 = dma.done.wait [#allocation4], 256  }
 0x1c4   :  { %283 = vsyncadd [#allocation4], 4294967040 }
 0x1c5   :  { %209 = vsyncpa [#allocation4], 1 }

</bundles_post_ra>
